<compile_context>
chip_gen: v7x
topology: tpu7x:2x2x1
jax: 0.10.0
libtpu: 0.0.40
codegen_flags: <defaults>
</compile_context>

<pallas_src>
import functools

import jax
import jax.numpy as jnp
from jax.experimental import pallas as pl
from jax.experimental.pallas import tpu as pltpu


# Below this many MAC elements (B*M*N*K) the per-grid-step Pallas overhead
# exceeds the work; let XLA's native matmul handle it.
_PALLAS_MIN_MACS = 2 ** 18


def _prod(xs):
    p = 1
    for x in xs:
        p *= int(x)
    return p


def _round_up(x, m):
    return ((x + m - 1) // m) * m


@functools.lru_cache(maxsize=1)
def _vmem_capacity_bytes():
    try:
        return int(pltpu.get_tpu_info().vmem_capacity_bytes)
    except Exception:
        return 64 << 20  # conservative default: v7x per-TensorCore VMEM


@functools.lru_cache(maxsize=1)
def _multi_tensorcore_chip():
    """True when one Pallas grid is sharded across >1 TensorCore (v7x-style)."""
    try:
        kind = jax.devices()[0].device_kind.lower()
    except Exception:
        kind = ""
    if "v7" in kind or "v5p" in kind or "v4" in kind:
        return True
    for tag in ("v2", "v3", "v5", "v6"):
        if tag in kind:
            return False
    # Unknown name: 64 MiB/TC VMEM is the v7x signature.
    return _vmem_capacity_bytes() <= (64 << 20)


def _working_set_bytes(tm, tn, tk, itemsize):
    # double-buffered A / B / out tiles + resident f32 accumulator scratch
    return 2 * (tm * tk + tk * tn) * itemsize + 2 * tm * tn * itemsize + tm * tn * 4


def _choose_tile(dim, align, cap, min_tile):
    """Tile for one dim: multiple of `align` (or the full extent), <= cap,
    chosen to avoid (or minimize) HBM padding."""
    cap = max(align, (cap // align) * align)
    if dim <= cap:
        return max(int(dim), 1)           # single full-extent block -> no padding
    min_tile = max(align, min(min_tile, cap))
    best_t, best_pad = cap, _round_up(dim, cap)
    t = cap
    while t >= min_tile:
        padded = _round_up(dim, t)
        if padded < best_pad:             # ties keep the larger tile
            best_t, best_pad = t, padded
        t -= align
    return best_t


def _pick_tiles(B, M, N, K, dtype):
    itemsize = jnp.dtype(dtype).itemsize
    sub = max(8, 32 // itemsize)          # sublane align: f32->8, bf16->16, i8->32
    cap = _vmem_capacity_bytes()
    budget = min(cap // 2, 48 << 20)      # keep working set well under scoped VMEM

    tm_cap, tn_cap, tk_cap = 512, 1024, 1024
    while _working_set_bytes(tm_cap, tn_cap, tk_cap, itemsize) > budget:
        if tk_cap > 512:
            tk_cap //= 2
        elif tn_cap > 256:
            tn_cap //= 2
        elif tm_cap > 128:
            tm_cap //= 2
        else:
            break

    tm = _choose_tile(M, sub, tm_cap, 128)
    tn = _choose_tile(N, 128, tn_cap, 256)
    tk = _choose_tile(K, 128, tk_cap, 256)

    # v7x (2 TensorCores / chip): expose >=2 parallel blocks so both cores work.
    if _multi_tensorcore_chip():
        n_par = B * (_round_up(M, tm) // tm) * (_round_up(N, tn) // tn)
        if n_par < 2:
            if tn % 256 == 0:
                tn //= 2
            elif tm % (2 * sub) == 0:
                tm //= 2
    return tm, tn, tk


def _bmm_kernel(a_ref, b_ref, o_ref, acc_ref):
    # Batch dim squeezed by the BlockSpecs: a_ref (tm, tk), b_ref (tk, tn),
    # o_ref (tm, tn).  acc_ref: (tm, tn) f32 scratch resident across the K axis.
    k = pl.program_id(3)

    @pl.when(k == 0)
    def _init():
        acc_ref[...] = jnp.zeros_like(acc_ref)

    acc_ref[...] += jnp.dot(a_ref[...], b_ref[...],
                            preferred_element_type=jnp.float32)

    @pl.when(k == pl.num_programs(3) - 1)
    def _done():
        o_ref[...] = acc_ref[...].astype(o_ref.dtype)


@functools.partial(
    jax.jit, static_argnames=("tm", "tn", "tk", "a_batched", "b_batched"))
def _pallas_bmm(a3, b3, *, tm, tn, tk, a_batched, b_batched):
    """Tiled batched matmul.  a3: (Ba, M, K), b3: (Bb, K, N) with Ba/Bb in {B, 1}."""
    Ba, M, K = a3.shape
    Bb, _, N = b3.shape
    B = max(Ba, Bb)
    out_dtype = a3.dtype          # inputs are pre-cast to the promoted dtype
    itemsize = jnp.dtype(out_dtype).itemsize

    Mp, Np, Kp = _round_up(M, tm), _round_up(N, tn), _round_up(K, tk)
    # Tile selection tries hard to make these no-ops (full-extent or exactly
    # dividing tiles); pad only when unavoidable.  Zero-padding K is exact.
    if (Mp, Kp) != (M, K):
        a3 = jnp.pad(a3, ((0, 0), (0, Mp - M), (0, Kp - K)))
    if (Kp, Np) != (K, N):
        b3 = jnp.pad(b3, ((0, 0), (0, Kp - K), (0, Np - N)))

    nM, nN, nK = Mp // tm, Np // tn, Kp // tk
    grid = (B, nM, nN, nK)

    # Broadcasting over batch is encoded in the index_map (no HBM copies).
    a_idx = (lambda b, i, j, k: (b, i, k)) if a_batched else (lambda b, i, j, k: (0, i, k))
    b_idx = (lambda b, i, j, k: (b, k, j)) if b_batched else (lambda b, i, j, k: (0, k, j))

    ws = _working_set_bytes(tm, tn, tk, itemsize)
    vmem_limit = int(min(_vmem_capacity_bytes() * 3 // 4, max(2 * ws, 48 << 20)))

    flops = 2 * B * Mp * Np * Kp
    bytes_accessed = (B * nN * Mp * Kp * itemsize     # A re-streamed per N block
                      + B * nM * Kp * Np * itemsize   # B re-streamed per M block
                      + B * Mp * Np * itemsize)       # output written once

    out = pl.pallas_call(
        _bmm_kernel,
        out_shape=jax.ShapeDtypeStruct((B, Mp, Np), out_dtype),
        grid_spec=pltpu.PrefetchScalarGridSpec(
            num_scalar_prefetch=0,
            grid=grid,
            in_specs=[
                pl.BlockSpec((None, tm, tk), a_idx),    # leading batch dim squeezed
                pl.BlockSpec((None, tk, tn), b_idx),
            ],
            out_specs=pl.BlockSpec((None, tm, tn), lambda b, i, j, k: (b, i, j)),
            scratch_shapes=[pltpu.VMEM((tm, tn), jnp.float32)],
        ),
        compiler_params=pltpu.CompilerParams(
            dimension_semantics=("parallel", "parallel", "parallel", "arbitrary"),
            vmem_limit_bytes=vmem_limit,
        ),
        cost_estimate=pl.CostEstimate(
            flops=flops, transcendentals=0, bytes_accessed=bytes_accessed),
    )(a3, b3)

    if (Mp, Np) != (M, N):
        out = out[:, :M, :N]
    return out


def _as_batched3d(x, x_batch, batch, B, rows, cols):
    """Reshape x to (B or 1, rows, cols); return (array, has_real_batch_axis)."""
    if _prod(x_batch) == 1:
        return x.reshape((1, rows, cols)), False
    if tuple(x_batch) == tuple(batch):
        return x.reshape((B, rows, cols)), True
    # Rare partial broadcast (e.g. (2,1) vs (1,3)): materialize only then.
    xb = jnp.broadcast_to(x, tuple(batch) + (rows, cols))
    return xb.reshape((B, rows, cols)), True


def matmul(a, b):
    """JAX/Pallas equivalent of torch.matmul(a, b) for >=1-D inputs."""
    a = jnp.asarray(a)
    b = jnp.asarray(b)

    a_1d = a.ndim == 1
    b_1d = b.ndim == 1
    if a_1d:
        a = a[None, :]          # (1, K)
    if b_1d:
        b = b[:, None]          # (K, 1)

    out_dtype = jnp.dtype(jnp.promote_types(a.dtype, b.dtype))

    M, K = a.shape[-2], a.shape[-1]
    K2, N = b.shape[-2], b.shape[-1]
    if K != K2:
        raise ValueError(f"inner dims mismatch: {K} vs {K2}")

    a_batch = a.shape[:-2]
    b_batch = b.shape[:-2]
    batch = jnp.broadcast_shapes(a_batch, b_batch)
    B = _prod(batch)

    pallas_dtype = out_dtype in (jnp.dtype(jnp.float32), jnp.dtype(jnp.bfloat16))
    tiny = B * M * N * K < _PALLAS_MIN_MACS

    if tiny or not pallas_dtype:
        # Tiny / non-f32/bf16 problems: XLA's native matmul is the right tool.
        prec = (jax.lax.Precision.HIGHEST
                if jnp.issubdtype(out_dtype, jnp.floating) else None)
        out = jnp.matmul(a, b, precision=prec)
    else:
        a = a.astype(out_dtype)
        b = b.astype(out_dtype)
        if _prod(b_batch) == 1 and B > 1:
            # b is (effectively) a shared 2-D weight: fold batch into M so the MXU
            # sees one big (B*M, K) x (K, N) problem and b is streamed only once.
            a2 = a.reshape((1, B * M, K))
            b2 = b.reshape((1, K, N))
            tm, tn, tk = _pick_tiles(1, B * M, N, K, out_dtype)
            out = _pallas_bmm(a2, b2, tm=tm, tn=tn, tk=tk,
                              a_batched=False, b_batched=False)
        else:
            a3, a_batched = _as_batched3d(a, a_batch, batch, B, M, K)
            b3, b_batched = _as_batched3d(b, b_batch, batch, B, K, N)
            tm, tn, tk = _pick_tiles(B, M, N, K, out_dtype)
            out = _pallas_bmm(a3, b3, tm=tm, tn=tn, tk=tk,
                              a_batched=a_batched, b_batched=b_batched)
        out = out.reshape(tuple(batch) + (M, N))

    # Undo the 1-D promotions, matching torch.matmul's squeeze rules.
    if a_1d and b_1d:
        out = out.reshape(out.shape[:-2])
    elif a_1d:
        out = jnp.squeeze(out, axis=-2)
    elif b_1d:
        out = jnp.squeeze(out, axis=-1)
    return out


class Matmul:
    """Mirror of distiller.modules.matmul.Matmul (stateless)."""

    def __call__(self, a, b):
        return matmul(a, b)


def _ref(a, b):
    return jnp.matmul(a, b, precision=jax.lax.Precision.HIGHEST)


def _check(out, ref, name, rtol=5e-3):
    # rtol=5e-3 on max-err vs max-scale: tight enough to catch padding /
    # accumulation bugs (O(1) errors) while tolerating the MXU's multi-pass
    # f32 matmul precision modes.
    out = jnp.asarray(out, jnp.float32)
    ref = jnp.asarray(ref, jnp.float32)
    assert out.shape == ref.shape, f"{name}: shape {out.shape} vs {ref.shape}"
    err = float(jnp.max(jnp.abs(out - ref)))
    scale = float(jnp.max(jnp.abs(ref))) + 1e-6
    assert err <= rtol * scale, f"{name}: max err {err} vs scale {scale}"


if __name__ == "__main__":
    key = jax.random.PRNGKey(0)
    k1, k2, k3, k4, k5, k6 = jax.random.split(key, 6)
    mm = Matmul()

    # 1) Batched f32, non-tile-multiple shapes -> full-extent tiles, no HBM padding.
    a = jax.random.normal(k1, (2, 200, 192), dtype=jnp.float32)
    b = jax.random.normal(k2, (2, 192, 160), dtype=jnp.float32)
    _check(jax.block_until_ready(mm(a, b)), _ref(a, b), "batched")

    # 2) Shared 2-D weight -> batch folded into M, single big matmul.
    w = jax.random.normal(k3, (192, 160), dtype=jnp.float32)
    _check(jax.block_until_ready(mm(a, w)), _ref(a, w), "shared-weight fold")

    # 3) 2-D a broadcast against batched b -> index_map broadcasting (no copy).
    a2d = jax.random.normal(k4, (200, 192), dtype=jnp.float32)
    _check(jax.block_until_ready(mm(a2d, b)), _ref(a2d, b), "broadcast a")

    # 4) Plain 2-D matmul -> Pallas path, single-tile grid.
    a5 = jax.random.normal(k5, (200, 192), dtype=jnp.float32)
    b5 = jax.random.normal(k6, (192, 160), dtype=jnp.float32)
    _check(jax.block_until_ready(mm(a5, b5)), _ref(a5, b5), "2-D")

    # 5) bf16 inputs -> dtype-aware sublane alignment, f32 accumulation.
    ab = jax.random.normal(k1, (2, 256, 256), dtype=jnp.bfloat16)
    wb = jax.random.normal(k2, (256, 384), dtype=jnp.bfloat16)
    _check(jax.block_until_ready(mm(ab, wb)), _ref(ab, wb), "bf16", rtol=2e-2)

    # 6) Tiny shapes (sub-(128,128)) -> XLA fallback, semantics preserved.
    ta = jax.random.normal(k1, (2, 8, 32), dtype=jnp.float32)
    tb = jax.random.normal(k2, (2, 32, 16), dtype=jnp.float32)
    _check(jax.block_until_ready(mm(ta, tb)), _ref(ta, tb), "tiny fallback")
    tv = jax.random.normal(k3, (32,), dtype=jnp.float32)
    _check(jax.block_until_ready(mm(tv, tb[0])), _ref(tv, tb[0]), "1-D a")

    print("KERNEL_OK")
</pallas_src>

<mosaic_0001>
module attributes {stable_mosaic.version = 11 : i64} {
  func.func @_bmm_kernel(%arg0: i32, %arg1: i32, %arg2: i32, %arg3: i32, %arg4: memref<1x200x192xf32, #tpu.memory_space<vmem>>, %arg5: memref<1x192x160xf32, #tpu.memory_space<vmem>>, %arg6: memref<1x200x160xf32, #tpu.memory_space<vmem>>, %arg7: memref<200x160xf32, #tpu.memory_space<vmem>>) attributes {dimension_semantics = [#tpu.dimension_semantics<parallel>, #tpu.dimension_semantics<parallel>, #tpu.dimension_semantics<parallel>, #tpu.dimension_semantics<arbitrary>], iteration_bounds = array<i64: 2, 1, 1, 1>, scalar_prefetch = 0 : i64, scratch_operands = 1 : i64, tpu.core_type = #tpu.core_type<tc>, window_params = [{transform_indices = @transform_0, window_bounds = array<i64: 1, 200, 192>}, {transform_indices = @transform_1, window_bounds = array<i64: 1, 192, 160>}, {transform_indices = @transform_2, window_bounds = array<i64: 1, 200, 160>}]} {
    %c0_i32 = arith.constant 0 : i32
    %0 = arith.cmpi eq, %arg3, %c0_i32 : i32
    %1 = arith.extui %0 : i1 to i32
    %c0_i32_0 = arith.constant 0 : i32
    %2 = arith.cmpi ne, %1, %c0_i32_0 : i32
    scf.if %2 {
      %cst_12 = arith.constant 0.000000e+00 : f32
      %14 = vector.broadcast %cst_12 : f32 to vector<200x160xf32>
      %c0_13 = arith.constant 0 : index
      %c0_14 = arith.constant 0 : index
      %15 = vector.load %arg7[%c0_13, %c0_14] : memref<200x160xf32, #tpu.memory_space<vmem>>, vector<200x160xf32>
      tpu.vector_store %arg7[%c0_13, %c0_14], %14 {strides = array<i32>} : memref<200x160xf32, #tpu.memory_space<vmem>>, vector<200x160xf32>,
    } else {
    }
    %c0 = arith.constant 0 : index
    %c0_1 = arith.constant 0 : index
    %3 = vector.load %arg7[%c0, %c0_1] : memref<200x160xf32, #tpu.memory_space<vmem>>, vector<200x160xf32>
    %c0_2 = arith.constant 0 : index
    %c0_3 = arith.constant 0 : index
    %c0_4 = arith.constant 0 : index
    %4 = vector.load %arg4[%c0_2, %c0_3, %c0_4] : memref<1x200x192xf32, #tpu.memory_space<vmem>>, vector<1x200x192xf32>
    %5 = vector.shape_cast %4 : vector<1x200x192xf32> to vector<200x192xf32>
    %c0_5 = arith.constant 0 : index
    %c0_6 = arith.constant 0 : index
    %c0_7 = arith.constant 0 : index
    %6 = vector.load %arg5[%c0_5, %c0_6, %c0_7] : memref<1x192x160xf32, #tpu.memory_space<vmem>>, vector<1x192x160xf32>
    %7 = vector.shape_cast %6 : vector<1x192x160xf32> to vector<192x160xf32>
    %cst = arith.constant dense<0.000000e+00> : vector<200x160xf32>
    %8 = tpu.matmul %5, %7, %cst {dimension_numbers = #tpu.dot_dimension_numbers<[1], [0], [0], [1], [0, 0, 1, 1], [], []>} : vector<200x192xf32>, vector<192x160xf32>, vector<200x160xf32> -> vector<200x160xf32>
    %9 = arith.addf %3, %8 : vector<200x160xf32>
    %c0_8 = arith.constant 0 : index
    %c0_9 = arith.constant 0 : index
    %10 = vector.load %arg7[%c0_8, %c0_9] : memref<200x160xf32, #tpu.memory_space<vmem>>, vector<200x160xf32>
    tpu.vector_store %arg7[%c0_8, %c0_9], %9 {strides = array<i32>} : memref<200x160xf32, #tpu.memory_space<vmem>>, vector<200x160xf32>,
    %c0_i32_10 = arith.constant 0 : i32
    %11 = arith.cmpi eq, %arg3, %c0_i32_10 : i32
    %12 = arith.extui %11 : i1 to i32
    %c0_i32_11 = arith.constant 0 : i32
    %13 = arith.cmpi ne, %12, %c0_i32_11 : i32
    scf.if %13 {
      %c0_12 = arith.constant 0 : index
      %c0_13 = arith.constant 0 : index
      %14 = vector.load %arg7[%c0_12, %c0_13] : memref<200x160xf32, #tpu.memory_space<vmem>>, vector<200x160xf32>
      %c0_14 = arith.constant 0 : index
      %c0_15 = arith.constant 0 : index
      %c0_16 = arith.constant 0 : index
      %15 = vector.load %arg6[%c0_14, %c0_15, %c0_16] : memref<1x200x160xf32, #tpu.memory_space<vmem>>, vector<1x200x160xf32>
      %16 = vector.shape_cast %15 : vector<1x200x160xf32> to vector<200x160xf32>
      %17 = vector.shape_cast %14 : vector<200x160xf32> to vector<1x200x160xf32>
      tpu.vector_store %arg6[%c0_14, %c0_15, %c0_16], %17 {strides = array<i32>} : memref<1x200x160xf32, #tpu.memory_space<vmem>>, vector<1x200x160xf32>,
    } else {
    }
    return
  }
  func.func @transform_0(%arg0: i32, %arg1: i32, %arg2: i32, %arg3: i32) -> (i32, i32, i32) {
    %c0_i32 = arith.constant 0 : i32
    return %arg0, %arg1, %arg3 : i32, i32, i32
  }
  func.func @transform_1(%arg0: i32, %arg1: i32, %arg2: i32, %arg3: i32) -> (i32, i32, i32) {
    %c0_i32 = arith.constant 0 : i32
    return %arg0, %arg3, %arg2 : i32, i32, i32
  }
  func.func @transform_2(%arg0: i32, %arg1: i32, %arg2: i32, %arg3: i32) -> (i32, i32, i32) {
    %c0_i32 = arith.constant 0 : i32
    return %arg0, %arg1, %arg2 : i32, i32, i32
  }
}

</mosaic_0001>

<bundles_post_ra>
// kernel: _pallas_bmm.1
= control target key start
LH: loop header
LB: loop body
LE: loop exit
PB: predicated region body
PF: predicated region fallthrough
CT: control target
= control target key end

     0   :  { %s1298_s9 = smov 0   ;;  %s1300_s10 = smov 0   ;;  %s1596_s0 = inlined_call_operand.vmem [shape: f32[2,200,192], index: 0, kind: input, shape index: {}]   ;;  %s1597_s1 = inlined_call_operand.vmem [shape: f32[2,192,160], index: 1, kind: input, shape index: {}]   ;;  %s1598_s2 = inlined_call_operand.vmem [shape: f32[2,200,160], index: 2, kind: output, shape index: {}]  }
   0x1   :  { %s1302_s11 = smov 0  }
   0x2 LB: > { %s38_s12 = sadd.s32 1, %s1276_s10  ;;  %p1128_p0 = scmp.ge.s32.totalorder %s1280_s11, 1  ;;  %s1280_s11 = sphi %s1302_s11, %s12_s11   ;;  %s1276_s10 = sphi %s1300_s10, %s1600_s10   ;;  %s1272_s9 = sphi %s1298_s9, %s1599_s9  }
   0x3   : > { %p40_p1 = scmp.ge.s32.totalorder %s38_s12, 2  ;;  %p182_p2 = scmp.lt.s32.totalorder %s1280_s11, 3 }
   0x5   : > { %s1602_s12 = smov (%p40_p1, %s38_s12), 0  ;;  %p183_p3 = pnand %p1128_p0, %p182_p2 }
   0x6   : > { %p238_p4 = scmp.lt.s32.totalorder (!%p183_p3), %s1272_s9, 1  ;;  %vm487_vm0 = vcmask (!%p183_p3), 523264   ;;  %vm289_vm1 = vcmask (!%p183_p3), 261120  }
   0x7   : > { %186 = sbr.rel (%p183_p3) target bundleno = 342 (0x156), region = 28 }
   0xe   : > { %s1604_s9 = smov (!%p238_p4, %s1272_s9), 1 }
   0xf   : > { %s1231_s13 = smul.u32 400, %s1604_s9 }
  0x10   : > { %s1232_s14 = smul.u32 384, %s1604_s9 }
  0x11   : > { %s1325_s17 = scalar_lea.vmem %s1596_s0, %s1231_s13  ;;  %s1485_s23 = scalar_lea.vmem %s1598_s2, %s1231_s13 }
  0x12   : > { %s1330_s20 = scalar_lea.vmem %s1597_s1, %s1232_s14  ;;  %v390_v0 = vld [vmem:[%s1325_s17 + $0x8] sm:$0xff]  ;;  %v416_v1 = vld [vmem:[%s1325_s17 + $0xd8] sm:$0xff] }
  0x13   : > { %v440_v2 = vld [vmem:[%s1330_s20 + $0x8] sm:$0xff]  ;;  %v442_v3 = vld [vmem:[%s1330_s20 + $0x18] sm:$0xff]  ;;  %v439_v4 = vld [vmem:[%s1330_s20] sm:$0xff]  ;;  %1132 = vmatprep.mubr.msk.f32.mxu0 %vm487_vm0, %v390_v0  ;;  %1145 = vmatprep.mubr.msk.f32.mxu1 %vm487_vm0, %v416_v1 }
  0x14   : > { %v1159_v5 = vpack.c.bf16 %v442_v3, %v440_v2  ;;  %v441_v6 = vld [vmem:[%s1330_s20 + $0x10] sm:$0xff]  ;;  %v444_v7 = vld [vmem:[%s1330_s20 + $0x28] sm:$0xff]  ;;  %v446_v8 = vld [vmem:[%s1330_s20 + $0x38] sm:$0xff] }
  0x15   : > { %v1161_v9 = vpack.c.bf16 %v441_v6, %v439_v4  ;;  %v1163_v10 = vpack.c.bf16 %v446_v8, %v444_v7  ;;  %v443_v11 = vld [vmem:[%s1330_s20 + $0x20] sm:$0xff]  ;;  %v445_v12 = vld [vmem:[%s1330_s20 + $0x30] sm:$0xff]  ;;  %v448_v13 = vld [vmem:[%s1330_s20 + $0x48] sm:$0xff] }
  0x16   : > { %1160 = vmatprep.subr.bf16.mxu0 %v1159_v5  ;;  %1207 = vmatprep.subr.bf16.mxu1 %v1159_v5  ;;  %v450_v14 = vld [vmem:[%s1330_s20 + $0x58] sm:$0xff]  ;;  %v1165_v15 = vpack.c.bf16 %v445_v12, %v443_v11  ;;  %v447_v17 = vld [vmem:[%s1330_s20 + $0x40] sm:$0xff]  ;;  %v449_v18 = vld [vmem:[%s1330_s20 + $0x50] sm:$0xff] }
  0x17   : > { %1162 = vmatpush1.bf16.msra.mxu0 %v1161_v9  ;;  %1219 = vmatpush1.bf16.msra.mxu1 %v1161_v9  ;;  %v1167_v16 = vpack.c.bf16 %v450_v14, %v448_v13  ;;  %v452_v19 = vld [vmem:[%s1330_s20 + $0x68] sm:$0xff]  ;;  %v454_v20 = vld [vmem:[%s1330_s20 + $0x78] sm:$0xff]  ;;  %v1169_v21 = vpack.c.bf16 %v449_v18, %v447_v17  ;;  %v451_v23 = vld [vmem:[%s1330_s20 + $0x60] sm:$0xff] }
  0x18   : > { %1164 = vmatprep.subr.bf16.mxu0 %v1163_v10  ;;  %1208 = vmatprep.subr.bf16.mxu1 %v1163_v10  ;;  %v1171_v22 = vpack.c.bf16 %v454_v20, %v452_v19  ;;  %v453_v24 = vld [vmem:[%s1330_s20 + $0x70] sm:$0xff]  ;;  %v456_v25 = vld [vmem:[%s1330_s20 + $0x88] sm:$0xff]  ;;  %v458_v26 = vld [vmem:[%s1330_s20 + $0x98] sm:$0xff] }
  0x19   : > { %v1173_v27 = vpack.c.bf16 %v453_v24, %v451_v23  ;;  %v1175_v28 = vpack.c.bf16 %v458_v26, %v456_v25  ;;  %v455_v29 = vld [vmem:[%s1330_s20 + $0x80] sm:$0xff]  ;;  %v457_v30 = vld [vmem:[%s1330_s20 + $0x90] sm:$0xff]  ;;  %v460_v31 = vld [vmem:[%s1330_s20 + $0xa8] sm:$0xff] }
  0x1a   : > { %v462_v32 = vld [vmem:[%s1330_s20 + $0xb8] sm:$0xff]  ;;  %v1177_v33 = vpack.c.bf16 %v457_v30, %v455_v29  ;;  %v459_v35 = vld [vmem:[%s1330_s20 + $0xa0] sm:$0xff]  ;;  %v461_v36 = vld [vmem:[%s1330_s20 + $0xb0] sm:$0xff] }
  0x1b   : > { %1166 = vmatpush1.bf16.msra.mxu0 %v1165_v15  ;;  %1220 = vmatpush1.bf16.msra.mxu1 %v1165_v15  ;;  %v1179_v34 = vpack.c.bf16 %v462_v32, %v460_v31  ;;  %v464_v37 = vld [vmem:[%s1330_s20 + $0xc8] sm:$0xff]  ;;  %v466_v38 = vld [vmem:[%s1330_s20 + $0xd8] sm:$0xff]  ;;  %v1181_v39 = vpack.c.bf16 %v461_v36, %v459_v35  ;;  %v463_v41 = vld [vmem:[%s1330_s20 + $0xc0] sm:$0xff] }
  0x1c   : > { %1168 = vmatprep.subr.bf16.mxu0 %v1167_v16  ;;  %1209 = vmatprep.subr.bf16.mxu1 %v1167_v16  ;;  %v1183_v40 = vpack.c.bf16 %v466_v38, %v464_v37  ;;  %v465_v42 = vld [vmem:[%s1330_s20 + $0xd0] sm:$0xff]  ;;  %v468_v43 = vld [vmem:[%s1330_s20 + $0xe8] sm:$0xff]  ;;  %v470_v44 = vld [vmem:[%s1330_s20 + $0xf8] sm:$0xff] }
  0x1d   : > { %v1185_v45 = vpack.c.bf16 %v465_v42, %v463_v41  ;;  %v1187_v46 = vpack.c.bf16 %v470_v44, %v468_v43  ;;  %v467_v47 = vld [vmem:[%s1330_s20 + $0xe0] sm:$0xff]  ;;  %v469_v48 = vld [vmem:[%s1330_s20 + $0xf0] sm:$0xff]  ;;  %v472_v49 = vld [vmem:[%s1330_s20 + $0x108] sm:$0xff] }
  0x1e   : > { %v474_v50 = vld [vmem:[%s1330_s20 + $0x118] sm:$0xff]  ;;  %v1189_v51 = vpack.c.bf16 %v469_v48, %v467_v47  ;;  %v471_v53 = vld [vmem:[%s1330_s20 + $0x100] sm:$0xff]  ;;  %v473_v54 = vld [vmem:[%s1330_s20 + $0x110] sm:$0xff] }
  0x1f   : > { %1170 = vmatpush1.bf16.msra.mxu0 %v1169_v21  ;;  %1221 = vmatpush1.bf16.msra.mxu1 %v1169_v21  ;;  %v1191_v52 = vpack.c.bf16 %v474_v50, %v472_v49  ;;  %v476_v55 = vld [vmem:[%s1330_s20 + $0x128] sm:$0xff]  ;;  %v478_v56 = vld [vmem:[%s1330_s20 + $0x138] sm:$0xff]  ;;  %v1193_v57 = vpack.c.bf16 %v473_v54, %v471_v53  ;;  %v475_v59 = vld [vmem:[%s1330_s20 + $0x120] sm:$0xff] }
  0x20   : > { %1172 = vmatprep.subr.bf16.mxu0 %v1171_v22  ;;  %1210 = vmatprep.subr.bf16.mxu1 %v1171_v22  ;;  %v1195_v58 = vpack.c.bf16 %v478_v56, %v476_v55  ;;  %v477_v60 = vld [vmem:[%s1330_s20 + $0x130] sm:$0xff]  ;;  %v480_v61 = vld [vmem:[%s1330_s20 + $0x148] sm:$0xff]  ;;  %v482_v62 = vld [vmem:[%s1330_s20 + $0x158] sm:$0xff] }
  0x21   : > { %v1197_v63 = vpack.c.bf16 %v477_v60, %v475_v59  ;;  %v1199_v0 = vpack.c.bf16 %v482_v62, %v480_v61  ;;  %v479_v1 = vld [vmem:[%s1330_s20 + $0x140] sm:$0xff]  ;;  %v481_v2 = vld [vmem:[%s1330_s20 + $0x150] sm:$0xff]  ;;  %v484_v3 = vld [vmem:[%s1330_s20 + $0x168] sm:$0xff] }
  0x22   : > { %v486_v4 = vld [vmem:[%s1330_s20 + $0x178] sm:$0xff]  ;;  %v1201_v5 = vpack.c.bf16 %v481_v2, %v479_v1  ;;  %v483_v7 = vld [vmem:[%s1330_s20 + $0x160] sm:$0xff]  ;;  %v485_v8 = vld [vmem:[%s1330_s20 + $0x170] sm:$0xff] }
  0x23   : > { %1174 = vmatpush1.bf16.msra.mxu0 %v1173_v27  ;;  %1222 = vmatpush1.bf16.msra.mxu1 %v1173_v27  ;;  %v1203_v6 = vpack.c.bf16 %v486_v4, %v484_v3  ;;  %v1205_v9 = vpack.c.bf16 %v485_v8, %v483_v7  ;;  %v389_v10 = vld [vmem:[%s1325_s17] sm:$0xff]  ;;  %v415_v11 = vld [vmem:[%s1325_s17 + $0xd0] sm:$0xff]  ;;  %v392_v12 = vld [vmem:[%s1325_s17 + $0x18] sm:$0xff] }
  0x24   : > { %1176 = vmatprep.subr.bf16.mxu0 %v1175_v28  ;;  %1211 = vmatprep.subr.bf16.mxu1 %v1175_v28  ;;  %v418_v13 = vld [vmem:[%s1325_s17 + $0xe8] sm:$0xff]  ;;  %v391_v14 = vld [vmem:[%s1325_s17 + $0x10] sm:$0xff]  ;;  %v417_v15 = vld [vmem:[%s1325_s17 + $0xe0] sm:$0xff] }
  0x25   : > { %v394_v16 = vld [vmem:[%s1325_s17 + $0x28] sm:$0xff]  ;;  %v420_v17 = vld [vmem:[%s1325_s17 + $0xf8] sm:$0xff]  ;;  %v393_v18 = vld [vmem:[%s1325_s17 + $0x20] sm:$0xff] }
  0x26   : > { %v419_v19 = vld [vmem:[%s1325_s17 + $0xf0] sm:$0xff]  ;;  %v396_v20 = vld [vmem:[%s1325_s17 + $0x38] sm:$0xff]  ;;  %v422_v21 = vld [vmem:[%s1325_s17 + $0x108] sm:$0xff] }
  0x27   : > { %1178 = vmatpush1.bf16.msra.mxu0 %v1177_v33  ;;  %1223 = vmatpush1.bf16.msra.mxu1 %v1177_v33  ;;  %v395_v22 = vld [vmem:[%s1325_s17 + $0x30] sm:$0xff]  ;;  %v421_v23 = vld [vmem:[%s1325_s17 + $0x100] sm:$0xff]  ;;  %v398_v24 = vld [vmem:[%s1325_s17 + $0x48] sm:$0xff] }
  0x28   : > { %1180 = vmatprep.subr.bf16.mxu0 %v1179_v34  ;;  %1212 = vmatprep.subr.bf16.mxu1 %v1179_v34  ;;  %v424_v25 = vld [vmem:[%s1325_s17 + $0x118] sm:$0xff]  ;;  %v397_v26 = vld [vmem:[%s1325_s17 + $0x40] sm:$0xff]  ;;  %v423_v27 = vld [vmem:[%s1325_s17 + $0x110] sm:$0xff] }
  0x29   : > { %v400_v28 = vld [vmem:[%s1325_s17 + $0x58] sm:$0xff]  ;;  %v426_v29 = vld [vmem:[%s1325_s17 + $0x128] sm:$0xff]  ;;  %v399_v30 = vld [vmem:[%s1325_s17 + $0x50] sm:$0xff] }
  0x2a   : > { %v425_v31 = vld [vmem:[%s1325_s17 + $0x120] sm:$0xff]  ;;  %v402_v32 = vld [vmem:[%s1325_s17 + $0x68] sm:$0xff]  ;;  %v428_v33 = vld [vmem:[%s1325_s17 + $0x138] sm:$0xff] }
  0x2b   : > { %1182 = vmatpush1.bf16.msra.mxu0 %v1181_v39  ;;  %1224 = vmatpush1.bf16.msra.mxu1 %v1181_v39  ;;  %v401_v34 = vld [vmem:[%s1325_s17 + $0x60] sm:$0xff]  ;;  %v427_v35 = vld [vmem:[%s1325_s17 + $0x130] sm:$0xff]  ;;  %v404_v36 = vld [vmem:[%s1325_s17 + $0x78] sm:$0xff] }
  0x2c   : > { %1184 = vmatprep.subr.bf16.mxu0 %v1183_v40  ;;  %1213 = vmatprep.subr.bf16.mxu1 %v1183_v40  ;;  %v430_v37 = vld [vmem:[%s1325_s17 + $0x148] sm:$0xff]  ;;  %v403_v38 = vld [vmem:[%s1325_s17 + $0x70] sm:$0xff]  ;;  %v429_v39 = vld [vmem:[%s1325_s17 + $0x140] sm:$0xff] }
  0x2d   : > { %v406_v40 = vld [vmem:[%s1325_s17 + $0x88] sm:$0xff]  ;;  %v432_v41 = vld [vmem:[%s1325_s17 + $0x158] sm:$0xff]  ;;  %v405_v42 = vld [vmem:[%s1325_s17 + $0x80] sm:$0xff] }
  0x2e   : > { %v431_v43 = vld [vmem:[%s1325_s17 + $0x150] sm:$0xff]  ;;  %v408_v44 = vld [vmem:[%s1325_s17 + $0x98] sm:$0xff]  ;;  %v433_v47 = vld [vmem:[%s1325_s17 + $0x160] sm:$0xff] }
  0x2f   : > { %1186 = vmatpush1.bf16.msra.mxu0 %v1185_v45  ;;  %1225 = vmatpush1.bf16.msra.mxu1 %v1185_v45  ;;  %v434_v45 = vld [vmem:[%s1325_s17 + $0x168] sm:$0xff]  ;;  %v436_v49 = vld [vmem:[%s1325_s17 + $0x178] sm:$0xff]  ;;  %v409_v50 = vld [vmem:[%s1325_s17 + $0xa0] sm:$0xff] }
  0x30   : > { %1188 = vmatprep.subr.bf16.mxu0 %v1187_v46  ;;  %1214 = vmatprep.subr.bf16.mxu1 %v1187_v46  ;;  %v407_v46 = vld [vmem:[%s1325_s17 + $0x90] sm:$0xff]  ;;  %v410_v48 = vld [vmem:[%s1325_s17 + $0xa8] sm:$0xff]  ;;  %v437_v55 = vld [vmem:[%s1325_s17 + $0x180] sm:$0xff] }
  0x31   : > { %v438_v53 = vld [vmem:[%s1325_s17 + $0x188] sm:$0xff]  ;;  %v411_v54 = vld [vmem:[%s1325_s17 + $0xb0] sm:$0xff] }
  0x32   : > { %v414_v56 = vld [vmem:[%s1325_s17 + $0xc8] sm:$0xff] }
  0x33   : > { %1190 = vmatpush1.bf16.msra.mxu0 %v1189_v51  ;;  %1226 = vmatpush1.bf16.msra.mxu1 %v1189_v51  ;;  %v435_v51 = vld [vmem:[%s1325_s17 + $0x170] sm:$0xff] }
  0x34   : > { %1192 = vmatprep.subr.bf16.mxu0 %v1191_v52  ;;  %1215 = vmatprep.subr.bf16.mxu1 %v1191_v52  ;;  %v412_v52 = vld [vmem:[%s1325_s17 + $0xb8] sm:$0xff] }
  0x37   : > { %1194 = vmatpush1.bf16.msra.mxu0 %v1193_v57  ;;  %1227 = vmatpush1.bf16.msra.mxu1 %v1193_v57  ;;  %v413_v57 = vld [vmem:[%s1325_s17 + $0xc0] sm:$0xff] }
  0x38   : > { %1196 = vmatprep.subr.bf16.mxu0 %v1195_v58  ;;  %1216 = vmatprep.subr.bf16.mxu1 %v1195_v58  ;;  %v1282_v58 = vmov 0.0  }
  0x39   : > { %290 = vst.msk [vmem:[#allocation2 + $0x8] sm:$0xff] %vm289_vm1, %v1282_v58  ;;  %292 = vst.msk [vmem:[#allocation2 + $0x18] sm:$0xff] %vm289_vm1, %v1282_v58 }
  0x3a   : > { %294 = vst.msk [vmem:[#allocation2 + $0x28] sm:$0xff] %vm289_vm1, %v1282_v58  ;;  %296 = vst.msk [vmem:[#allocation2 + $0x38] sm:$0xff] %vm289_vm1, %v1282_v58 }
  0x3b   : > { %1198 = vmatpush1.bf16.msra.mxu0 %v1197_v63  ;;  %1228 = vmatpush1.bf16.msra.mxu1 %v1197_v63  ;;  %298 = vst.msk [vmem:[#allocation2 + $0x48] sm:$0xff] %vm289_vm1, %v1282_v58  ;;  %300 = vst.msk [vmem:[#allocation2 + $0x58] sm:$0xff] %vm289_vm1, %v1282_v58 }
  0x3c   : > { %1200 = vmatprep.subr.bf16.mxu0 %v1199_v0  ;;  %1217 = vmatprep.subr.bf16.mxu1 %v1199_v0  ;;  %302 = vst.msk [vmem:[#allocation2 + $0x68] sm:$0xff] %vm289_vm1, %v1282_v58  ;;  %304 = vst.msk [vmem:[#allocation2 + $0x78] sm:$0xff] %vm289_vm1, %v1282_v58 }
  0x3d   : > { %306 = vst.msk [vmem:[#allocation2 + $0x88] sm:$0xff] %vm289_vm1, %v1282_v58  ;;  %308 = vst.msk [vmem:[#allocation2 + $0x98] sm:$0xff] %vm289_vm1, %v1282_v58 }
  0x3e   : > { %310 = vst.msk [vmem:[#allocation2 + $0xa8] sm:$0xff] %vm289_vm1, %v1282_v58  ;;  %312 = vst.msk [vmem:[#allocation2 + $0xb8] sm:$0xff] %vm289_vm1, %v1282_v58 }
  0x3f   : > { %1202 = vmatpush1.bf16.msra.mxu0 %v1201_v5  ;;  %1229 = vmatpush1.bf16.msra.mxu1 %v1201_v5  ;;  %314 = vst.msk [vmem:[#allocation2 + $0xc8] sm:$0xff] %vm289_vm1, %v1282_v58  ;;  %316 = vst.msk [vmem:[#allocation2 + $0xd8] sm:$0xff] %vm289_vm1, %v1282_v58 }
  0x40   : > { %1204 = vmatprep.subr.bf16.mxu0 %v1203_v6  ;;  %1218 = vmatprep.subr.bf16.mxu1 %v1203_v6  ;;  %318 = vst.msk [vmem:[#allocation2 + $0xe8] sm:$0xff] %vm289_vm1, %v1282_v58  ;;  %320 = vst.msk [vmem:[#allocation2 + $0xf8] sm:$0xff] %vm289_vm1, %v1282_v58  ;;  %v340_v59 = vld [vmem:[#allocation2 + $0x8] sm:$0xff]  ;;  %v342_v3 = vld [vmem:[#allocation2 + $0x18] sm:$0xff] }
  0x41   : > { %322 = vst.msk [vmem:[#allocation2 + $0x108] sm:$0xff] %vm289_vm1, %v1282_v58  ;;  %324 = vst.msk [vmem:[#allocation2 + $0x118] sm:$0xff] %vm289_vm1, %v1282_v58 }
  0x42   : > { %326 = vst.msk [vmem:[#allocation2 + $0x128] sm:$0xff] %vm289_vm1, %v1282_v58  ;;  %328 = vst.msk [vmem:[#allocation2 + $0x138] sm:$0xff] %vm289_vm1, %v1282_v58 }
  0x43   : > { %1206 = vmatpush1.bf16.msra.mxu0 %v1205_v9  ;;  %1230 = vmatpush1.bf16.msra.mxu1 %v1205_v9  ;;  %330 = vst.msk [vmem:[#allocation2 + $0x148] sm:$0xff] %vm289_vm1, %v1282_v58  ;;  %332 = vst.msk [vmem:[#allocation2 + $0x158] sm:$0xff] %vm289_vm1, %v1282_v58 }
  0x44   : > { %334 = vst.msk [vmem:[#allocation2 + $0x168] sm:$0xff] %vm289_vm1, %v1282_v58  ;;  %336 = vst.msk [vmem:[#allocation2 + $0x178] sm:$0xff] %vm289_vm1, %v1282_v58 }
  0x45   : > { %338 = vst.msk [vmem:[#allocation2 + $0x188] sm:$0xff] %vm289_vm1, %v1282_v58 }
  0x46   : > { %628 = vmatmul.mubr.f32.vlgmr.msra.gmra.mrb[0].mxu0 %v389_v10  ;;  %706 = vmatmul.mubr.f32.vlgmr.msra.gmra.mrb[0].mxu1 %v415_v11  ;;  %v366_v60 = vld [vmem:[#allocation2 + $0xd8] sm:$0xff]  ;;  %v344_v11 = vld [vmem:[#allocation2 + $0x28] sm:$0xff] }
  0x47   : > { %1133 = vmatprep.mubr.msk.f32.mxu0 %vm487_vm0, %v392_v12  ;;  %1146 = vmatprep.mubr.msk.f32.mxu1 %vm487_vm0, %v418_v13  ;;  %v368_v4 = vld [vmem:[#allocation2 + $0xe8] sm:$0xff]  ;;  %v370_v12 = vld [vmem:[#allocation2 + $0xf8] sm:$0xff] }
  0x4a   : > { %634 = vmatmul.mubr.f32.gmra.mrb[2].mxu0 %v391_v14  ;;  %712 = vmatmul.mubr.f32.gmra.mrb[2].mxu1 %v417_v15 }
  0x4b   : > { %1134 = vmatprep.mubr.msk.f32.mxu0 %vm487_vm0, %v394_v16  ;;  %1147 = vmatprep.mubr.msk.f32.mxu1 %vm487_vm0, %v420_v17 }
  0x4e   : > { %640 = vmatmul.mubr.f32.gmra.mrb[4].mxu0 %v393_v18  ;;  %718 = vmatmul.mubr.f32.gmra.mrb[4].mxu1 %v419_v19  ;;  %v346_v19 = vld [vmem:[#allocation2 + $0x38] sm:$0xff] }
  0x4f   : > { %1135 = vmatprep.mubr.msk.f32.mxu0 %vm487_vm0, %v396_v20  ;;  %1148 = vmatprep.mubr.msk.f32.mxu1 %vm487_vm0, %v422_v21 }
  0x52   : > { %646 = vmatmul.mubr.f32.gmra.mrb[6].mxu0 %v395_v22  ;;  %724 = vmatmul.mubr.f32.gmra.mrb[6].mxu1 %v421_v23  ;;  %v372_v22 = vld [vmem:[#allocation2 + $0x108] sm:$0xff] }
  0x53   : > { %1136 = vmatprep.mubr.msk.f32.mxu0 %vm487_vm0, %v398_v24  ;;  %1149 = vmatprep.mubr.msk.f32.mxu1 %vm487_vm0, %v424_v25 }
  0x56   : > { %652 = vmatmul.mubr.f32.gmra.mrb[8].mxu0 %v397_v26  ;;  %730 = vmatmul.mubr.f32.gmra.mrb[8].mxu1 %v423_v27 }
  0x57   : > { %1137 = vmatprep.mubr.msk.f32.mxu0 %vm487_vm0, %v400_v28  ;;  %1150 = vmatprep.mubr.msk.f32.mxu1 %vm487_vm0, %v426_v29  ;;  %v348_v29 = vld [vmem:[#allocation2 + $0x48] sm:$0xff] }
  0x5a   : > { %658 = vmatmul.mubr.f32.gmra.mrb[10].mxu0 %v399_v30  ;;  %736 = vmatmul.mubr.f32.gmra.mrb[10].mxu1 %v425_v31 }
  0x5b   : > { %1138 = vmatprep.mubr.msk.f32.mxu0 %vm487_vm0, %v402_v32  ;;  %1151 = vmatprep.mubr.msk.f32.mxu1 %vm487_vm0, %v428_v33  ;;  %v374_v32 = vld [vmem:[#allocation2 + $0x118] sm:$0xff] }
  0x5e   : > { %664 = vmatmul.mubr.f32.gmra.mrb[12].mxu0 %v401_v34  ;;  %742 = vmatmul.mubr.f32.gmra.mrb[12].mxu1 %v427_v35 }
  0x5f   : > { %1139 = vmatprep.mubr.msk.f32.mxu0 %vm487_vm0, %v404_v36  ;;  %1152 = vmatprep.mubr.msk.f32.mxu1 %vm487_vm0, %v430_v37 }
  0x62   : > { %670 = vmatmul.mubr.f32.gmra.mrb[14].mxu0 %v403_v38  ;;  %748 = vmatmul.mubr.f32.gmra.mrb[14].mxu1 %v429_v39  ;;  %v350_v39 = vld [vmem:[#allocation2 + $0x58] sm:$0xff] }
  0x63   : > { %1140 = vmatprep.mubr.msk.f32.mxu0 %vm487_vm0, %v406_v40  ;;  %1153 = vmatprep.mubr.msk.f32.mxu1 %vm487_vm0, %v432_v41 }
  0x66   : > { %676 = vmatmul.mubr.f32.gmra.mrb[16].mxu0 %v405_v42  ;;  %754 = vmatmul.mubr.f32.gmra.mrb[16].mxu1 %v431_v43  ;;  %v376_v42 = vld [vmem:[#allocation2 + $0x128] sm:$0xff] }
  0x67   : > { %1141 = vmatprep.mubr.msk.f32.mxu0 %vm487_vm0, %v408_v44  ;;  %1154 = vmatprep.mubr.msk.f32.mxu1 %vm487_vm0, %v434_v45 }
  0x6a   : > { %682 = vmatmul.mubr.f32.gmra.mrb[18].mxu0 %v407_v46  ;;  %760 = vmatmul.mubr.f32.gmra.mrb[18].mxu1 %v433_v47 }
  0x6b   : > { %1142 = vmatprep.mubr.msk.f32.mxu0 %vm487_vm0, %v410_v48  ;;  %1155 = vmatprep.mubr.msk.f32.mxu1 %vm487_vm0, %v436_v49  ;;  %v352_v49 = vld [vmem:[#allocation2 + $0x68] sm:$0xff] }
  0x6e   : > { %688 = vmatmul.mubr.f32.gmra.mrb[20].mxu0 %v409_v50  ;;  %766 = vmatmul.mubr.f32.gmra.mrb[20].mxu1 %v435_v51 }
  0x6f   : > { %1143 = vmatprep.mubr.msk.f32.mxu0 %vm487_vm0, %v412_v52  ;;  %1156 = vmatprep.mubr.msk.f32.mxu1 %vm487_vm0, %v438_v53  ;;  %v378_v52 = vld [vmem:[#allocation2 + $0x138] sm:$0xff] }
  0x72   : > { %694 = vmatmul.mubr.f32.gmra.mrb[22].mxu0 %v411_v54  ;;  %772 = vmatmul.mubr.f32.gmra.mrb[22].mxu1 %v437_v55 }
  0x73   : > { %1144 = vmatprep.mubr.msk.f32.mxu0 %vm487_vm0, %v414_v56 }
  0x76   : > { %700 = vmatmul.mubr.f32.gmra.mrb[24].mxu0 %v413_v57 }
 0x119   : > { %v629_v61 = vpop.f32.mrb[0].mxu0  ;;  %v707_v62 = vpop.f32.mrb[0].mxu1 }
 0x11a   : > { %v631_v63 = vpop.f32.mrb[1].mxu0  ;;  %v709_v0 = vpop.f32.mrb[1].mxu1  ;;  %932 = vst [vmem:[%s1485_s23] sm:$0xff] %v629_v61  ;;  %958 = vst [vmem:[%s1485_s23 + $0xd0] sm:$0xff] %v707_v62  ;;  %v380_v62 = vld [vmem:[#allocation2 + $0x148] sm:$0xff] }
 0x11b   : > { %v779_v1 = vadd.f32 %v631_v63, %v340_v59  ;;  %v805_v2 = vadd.f32 %v709_v0, %v366_v60  ;;  %v354_v59 = vld [vmem:[#allocation2 + $0x78] sm:$0xff] }
 0x11d   : > { %830 = vst.msk [vmem:[#allocation2 + $0x8] sm:$0xff] %vm289_vm1, %v779_v1  ;;  %v635_v5 = vpop.f32.mrb[2].mxu0  ;;  %856 = vst.msk [vmem:[#allocation2 + $0xd8] sm:$0xff] %vm289_vm1, %v805_v2  ;;  %v713_v6 = vpop.f32.mrb[2].mxu1 }
 0x11e   : > { %v637_v7 = vpop.f32.mrb[3].mxu0  ;;  %v715_v8 = vpop.f32.mrb[3].mxu1  ;;  %934 = vst [vmem:[%s1485_s23 + $0x10] sm:$0xff] %v635_v5  ;;  %960 = vst [vmem:[%s1485_s23 + $0xe0] sm:$0xff] %v713_v6  ;;  %v356_v5 = vld [vmem:[#allocation2 + $0x88] sm:$0xff] }
 0x11f   : > { %v781_v9 = vadd.f32 %v637_v7, %v342_v3  ;;  %v807_v10 = vadd.f32 %v715_v8, %v368_v4  ;;  %v382_v8 = vld [vmem:[#allocation2 + $0x158] sm:$0xff] }
 0x121   : > { %832 = vst.msk [vmem:[#allocation2 + $0x18] sm:$0xff] %vm289_vm1, %v781_v9  ;;  %v641_v13 = vpop.f32.mrb[4].mxu0  ;;  %858 = vst.msk [vmem:[#allocation2 + $0xe8] sm:$0xff] %vm289_vm1, %v807_v10  ;;  %v719_v14 = vpop.f32.mrb[4].mxu1 }
 0x122   : > { %v643_v15 = vpop.f32.mrb[5].mxu0  ;;  %v721_v16 = vpop.f32.mrb[5].mxu1  ;;  %936 = vst [vmem:[%s1485_s23 + $0x20] sm:$0xff] %v641_v13  ;;  %962 = vst [vmem:[%s1485_s23 + $0xf0] sm:$0xff] %v719_v14 }
 0x123   : > { %v783_v17 = vadd.f32 %v643_v15, %v344_v11  ;;  %v809_v18 = vadd.f32 %v721_v16, %v370_v12  ;;  %v358_v15 = vld [vmem:[#allocation2 + $0x98] sm:$0xff] }
 0x124   : > { %v883_v20 = vld [vmem:[#allocation2 + $0x8] sm:$0xff]  ;;  %v909_v21 = vld [vmem:[#allocation2 + $0xd8] sm:$0xff] }
 0x125   : > { %933 = vst.msk [vmem:[%s1485_s23 + $0x8] sm:$0xff] %vm289_vm1, %v883_v20  ;;  %959 = vst.msk [vmem:[%s1485_s23 + $0xd8] sm:$0xff] %vm289_vm1, %v909_v21  ;;  %v647_v23 = vpop.f32.mrb[6].mxu0  ;;  %v725_v24 = vpop.f32.mrb[6].mxu1 }
 0x126   : > { %834 = vst.msk [vmem:[#allocation2 + $0x28] sm:$0xff] %vm289_vm1, %v783_v17  ;;  %860 = vst.msk [vmem:[#allocation2 + $0xf8] sm:$0xff] %vm289_vm1, %v809_v18  ;;  %v649_v25 = vpop.f32.mrb[7].mxu0  ;;  %v727_v26 = vpop.f32.mrb[7].mxu1  ;;  %v384_v18 = vld [vmem:[#allocation2 + $0x168] sm:$0xff] }
 0x127   : > { %v785_v27 = vadd.f32 %v649_v25, %v346_v19  ;;  %v811_v28 = vadd.f32 %v727_v26, %v372_v22  ;;  %938 = vst [vmem:[%s1485_s23 + $0x30] sm:$0xff] %v647_v23  ;;  %964 = vst [vmem:[%s1485_s23 + $0x100] sm:$0xff] %v725_v24  ;;  %v360_v25 = vld [vmem:[#allocation2 + $0xa8] sm:$0xff] }
 0x128   : > { %v885_v30 = vld [vmem:[#allocation2 + $0x18] sm:$0xff]  ;;  %v911_v31 = vld [vmem:[#allocation2 + $0xe8] sm:$0xff] }
 0x129   : > { %935 = vst.msk [vmem:[%s1485_s23 + $0x18] sm:$0xff] %vm289_vm1, %v885_v30  ;;  %961 = vst.msk [vmem:[%s1485_s23 + $0xe8] sm:$0xff] %vm289_vm1, %v911_v31  ;;  %v653_v33 = vpop.f32.mrb[8].mxu0  ;;  %v731_v34 = vpop.f32.mrb[8].mxu1 }
 0x12a   : > { %836 = vst.msk [vmem:[#allocation2 + $0x38] sm:$0xff] %vm289_vm1, %v785_v27  ;;  %862 = vst.msk [vmem:[#allocation2 + $0x108] sm:$0xff] %vm289_vm1, %v811_v28  ;;  %v655_v35 = vpop.f32.mrb[9].mxu0  ;;  %v733_v36 = vpop.f32.mrb[9].mxu1  ;;  %v386_v28 = vld [vmem:[#allocation2 + $0x178] sm:$0xff] }
 0x12b   : > { %v787_v37 = vadd.f32 %v655_v35, %v348_v29  ;;  %v813_v38 = vadd.f32 %v733_v36, %v374_v32  ;;  %940 = vst [vmem:[%s1485_s23 + $0x40] sm:$0xff] %v653_v33  ;;  %966 = vst [vmem:[%s1485_s23 + $0x110] sm:$0xff] %v731_v34  ;;  %v362_v35 = vld [vmem:[#allocation2 + $0xb8] sm:$0xff] }
 0x12d   : > { %v887_v40 = vld [vmem:[#allocation2 + $0x28] sm:$0xff]  ;;  %v913_v41 = vld [vmem:[#allocation2 + $0xf8] sm:$0xff]  ;;  %838 = vst.msk [vmem:[#allocation2 + $0x48] sm:$0xff] %vm289_vm1, %v787_v37  ;;  %v659_v43 = vpop.f32.mrb[10].mxu0  ;;  %864 = vst.msk [vmem:[#allocation2 + $0x118] sm:$0xff] %vm289_vm1, %v813_v38  ;;  %v737_v44 = vpop.f32.mrb[10].mxu1 }
 0x12e   : > { %937 = vst.msk [vmem:[%s1485_s23 + $0x28] sm:$0xff] %vm289_vm1, %v887_v40  ;;  %963 = vst.msk [vmem:[%s1485_s23 + $0xf8] sm:$0xff] %vm289_vm1, %v913_v41  ;;  %v661_v45 = vpop.f32.mrb[11].mxu0  ;;  %v739_v46 = vpop.f32.mrb[11].mxu1  ;;  %v388_v38 = vld [vmem:[#allocation2 + $0x188] sm:$0xff] }
 0x12f   : > { %v789_v47 = vadd.f32 %v661_v45, %v350_v39  ;;  %v815_v48 = vadd.f32 %v739_v46, %v376_v42  ;;  %942 = vst [vmem:[%s1485_s23 + $0x50] sm:$0xff] %v659_v43  ;;  %968 = vst [vmem:[%s1485_s23 + $0x120] sm:$0xff] %v737_v44 }
 0x131   : > { %v889_v50 = vld [vmem:[#allocation2 + $0x38] sm:$0xff]  ;;  %v915_v51 = vld [vmem:[#allocation2 + $0x108] sm:$0xff]  ;;  %840 = vst.msk [vmem:[#allocation2 + $0x58] sm:$0xff] %vm289_vm1, %v789_v47  ;;  %v665_v53 = vpop.f32.mrb[12].mxu0  ;;  %866 = vst.msk [vmem:[#allocation2 + $0x128] sm:$0xff] %vm289_vm1, %v815_v48  ;;  %v743_v54 = vpop.f32.mrb[12].mxu1 }
 0x132   : > { %939 = vst.msk [vmem:[%s1485_s23 + $0x38] sm:$0xff] %vm289_vm1, %v889_v50  ;;  %965 = vst.msk [vmem:[%s1485_s23 + $0x108] sm:$0xff] %vm289_vm1, %v915_v51  ;;  %v667_v55 = vpop.f32.mrb[13].mxu0  ;;  %v745_v56 = vpop.f32.mrb[13].mxu1  ;;  %v364_v47 = vld [vmem:[#allocation2 + $0xc8] sm:$0xff] }
 0x133   : > { %v791_v57 = vadd.f32 %v667_v55, %v352_v49  ;;  %v817_v58 = vadd.f32 %v745_v56, %v378_v52  ;;  %944 = vst [vmem:[%s1485_s23 + $0x60] sm:$0xff] %v665_v53  ;;  %970 = vst [vmem:[%s1485_s23 + $0x130] sm:$0xff] %v743_v54 }
 0x134   : > { %v891_v60 = vld [vmem:[#allocation2 + $0x48] sm:$0xff]  ;;  %v917_v61 = vld [vmem:[#allocation2 + $0x118] sm:$0xff] }
 0x135   : > { %941 = vst.msk [vmem:[%s1485_s23 + $0x48] sm:$0xff] %vm289_vm1, %v891_v60  ;;  %967 = vst.msk [vmem:[%s1485_s23 + $0x118] sm:$0xff] %vm289_vm1, %v917_v61  ;;  %v671_v63 = vpop.f32.mrb[14].mxu0  ;;  %v749_v0 = vpop.f32.mrb[14].mxu1 }
 0x136   : > { %842 = vst.msk [vmem:[#allocation2 + $0x68] sm:$0xff] %vm289_vm1, %v791_v57  ;;  %868 = vst.msk [vmem:[#allocation2 + $0x138] sm:$0xff] %vm289_vm1, %v817_v58  ;;  %v673_v1 = vpop.f32.mrb[15].mxu0  ;;  %v751_v2 = vpop.f32.mrb[15].mxu1 }
 0x137   : > { %v793_v3 = vadd.f32 %v673_v1, %v354_v59  ;;  %v819_v4 = vadd.f32 %v751_v2, %v380_v62  ;;  %946 = vst [vmem:[%s1485_s23 + $0x70] sm:$0xff] %v671_v63  ;;  %972 = vst [vmem:[%s1485_s23 + $0x140] sm:$0xff] %v749_v0 }
 0x138   : > { %v893_v6 = vld [vmem:[#allocation2 + $0x58] sm:$0xff]  ;;  %v919_v7 = vld [vmem:[#allocation2 + $0x128] sm:$0xff] }
 0x139   : > { %943 = vst.msk [vmem:[%s1485_s23 + $0x58] sm:$0xff] %vm289_vm1, %v893_v6  ;;  %969 = vst.msk [vmem:[%s1485_s23 + $0x128] sm:$0xff] %vm289_vm1, %v919_v7  ;;  %v677_v9 = vpop.f32.mrb[16].mxu0  ;;  %v755_v10 = vpop.f32.mrb[16].mxu1 }
 0x13a   : > { %844 = vst.msk [vmem:[#allocation2 + $0x78] sm:$0xff] %vm289_vm1, %v793_v3  ;;  %870 = vst.msk [vmem:[#allocation2 + $0x148] sm:$0xff] %vm289_vm1, %v819_v4  ;;  %v679_v11 = vpop.f32.mrb[17].mxu0  ;;  %v757_v12 = vpop.f32.mrb[17].mxu1 }
 0x13b   : > { %v795_v13 = vadd.f32 %v679_v11, %v356_v5  ;;  %v821_v14 = vadd.f32 %v757_v12, %v382_v8  ;;  %948 = vst [vmem:[%s1485_s23 + $0x80] sm:$0xff] %v677_v9  ;;  %974 = vst [vmem:[%s1485_s23 + $0x150] sm:$0xff] %v755_v10 }
 0x13d   : > { %v895_v16 = vld [vmem:[#allocation2 + $0x68] sm:$0xff]  ;;  %v921_v17 = vld [vmem:[#allocation2 + $0x138] sm:$0xff]  ;;  %846 = vst.msk [vmem:[#allocation2 + $0x88] sm:$0xff] %vm289_vm1, %v795_v13  ;;  %v683_v19 = vpop.f32.mrb[18].mxu0  ;;  %872 = vst.msk [vmem:[#allocation2 + $0x158] sm:$0xff] %vm289_vm1, %v821_v14  ;;  %v761_v20 = vpop.f32.mrb[18].mxu1 }
 0x13e   : > { %945 = vst.msk [vmem:[%s1485_s23 + $0x68] sm:$0xff] %vm289_vm1, %v895_v16  ;;  %971 = vst.msk [vmem:[%s1485_s23 + $0x138] sm:$0xff] %vm289_vm1, %v921_v17  ;;  %v685_v21 = vpop.f32.mrb[19].mxu0  ;;  %v763_v22 = vpop.f32.mrb[19].mxu1 }
 0x13f   : > { %v797_v23 = vadd.f32 %v685_v21, %v358_v15  ;;  %v823_v24 = vadd.f32 %v763_v22, %v384_v18  ;;  %950 = vst [vmem:[%s1485_s23 + $0x90] sm:$0xff] %v683_v19  ;;  %976 = vst [vmem:[%s1485_s23 + $0x160] sm:$0xff] %v761_v20 }
 0x141   : > { %v897_v26 = vld [vmem:[#allocation2 + $0x78] sm:$0xff]  ;;  %v923_v27 = vld [vmem:[#allocation2 + $0x148] sm:$0xff]  ;;  %848 = vst.msk [vmem:[#allocation2 + $0x98] sm:$0xff] %vm289_vm1, %v797_v23  ;;  %v689_v29 = vpop.f32.mrb[20].mxu0  ;;  %874 = vst.msk [vmem:[#allocation2 + $0x168] sm:$0xff] %vm289_vm1, %v823_v24  ;;  %v767_v30 = vpop.f32.mrb[20].mxu1 }
 0x142   : > { %947 = vst.msk [vmem:[%s1485_s23 + $0x78] sm:$0xff] %vm289_vm1, %v897_v26  ;;  %973 = vst.msk [vmem:[%s1485_s23 + $0x148] sm:$0xff] %vm289_vm1, %v923_v27  ;;  %v691_v31 = vpop.f32.mrb[21].mxu0  ;;  %v769_v32 = vpop.f32.mrb[21].mxu1 }
 0x143   : > { %v799_v33 = vadd.f32 %v691_v31, %v360_v25  ;;  %v825_v34 = vadd.f32 %v769_v32, %v386_v28  ;;  %952 = vst [vmem:[%s1485_s23 + $0xa0] sm:$0xff] %v689_v29  ;;  %978 = vst [vmem:[%s1485_s23 + $0x170] sm:$0xff] %v767_v30 }
 0x144   : > { %v899_v36 = vld [vmem:[#allocation2 + $0x88] sm:$0xff]  ;;  %v925_v37 = vld [vmem:[#allocation2 + $0x158] sm:$0xff] }
 0x145   : > { %949 = vst.msk [vmem:[%s1485_s23 + $0x88] sm:$0xff] %vm289_vm1, %v899_v36  ;;  %975 = vst.msk [vmem:[%s1485_s23 + $0x158] sm:$0xff] %vm289_vm1, %v925_v37  ;;  %v695_v39 = vpop.f32.mrb[22].mxu0  ;;  %v773_v40 = vpop.f32.mrb[22].mxu1 }
 0x146   : > { %850 = vst.msk [vmem:[#allocation2 + $0xa8] sm:$0xff] %vm289_vm1, %v799_v33  ;;  %876 = vst.msk [vmem:[#allocation2 + $0x178] sm:$0xff] %vm289_vm1, %v825_v34  ;;  %v697_v41 = vpop.f32.mrb[23].mxu0  ;;  %v775_v42 = vpop.f32.mrb[23].mxu1 }
 0x147   : > { %v801_v43 = vadd.f32 %v697_v41, %v362_v35  ;;  %v827_v44 = vadd.f32 %v775_v42, %v388_v38  ;;  %954 = vst [vmem:[%s1485_s23 + $0xb0] sm:$0xff] %v695_v39  ;;  %980 = vst [vmem:[%s1485_s23 + $0x180] sm:$0xff] %v773_v40 }
 0x148   : > { %v901_v45 = vld [vmem:[#allocation2 + $0x98] sm:$0xff]  ;;  %v927_v46 = vld [vmem:[#allocation2 + $0x168] sm:$0xff] }
 0x149   : > { %951 = vst.msk [vmem:[%s1485_s23 + $0x98] sm:$0xff] %vm289_vm1, %v901_v45  ;;  %977 = vst.msk [vmem:[%s1485_s23 + $0x168] sm:$0xff] %vm289_vm1, %v927_v46  ;;  %v701_v48 = vpop.f32.mrb[24].mxu0 }
 0x14a   : > { %852 = vst.msk [vmem:[#allocation2 + $0xb8] sm:$0xff] %vm289_vm1, %v801_v43  ;;  %878 = vst.msk [vmem:[#allocation2 + $0x188] sm:$0xff] %vm289_vm1, %v827_v44  ;;  %v703_v49 = vpop.f32.mrb[25].mxu0 }
 0x14b   : > { %v803_v50 = vadd.f32 %v703_v49, %v364_v47  ;;  %956 = vst [vmem:[%s1485_s23 + $0xc0] sm:$0xff] %v701_v48 }
 0x14d   : > { %v903_v51 = vld [vmem:[#allocation2 + $0xa8] sm:$0xff]  ;;  %v929_v52 = vld [vmem:[#allocation2 + $0x178] sm:$0xff]  ;;  %854 = vst.msk [vmem:[#allocation2 + $0xc8] sm:$0xff] %vm289_vm1, %v803_v50 }
 0x14e   : > { %953 = vst.msk [vmem:[%s1485_s23 + $0xa8] sm:$0xff] %vm289_vm1, %v903_v51  ;;  %979 = vst.msk [vmem:[%s1485_s23 + $0x178] sm:$0xff] %vm289_vm1, %v929_v52 }
 0x151   : > { %v905_v53 = vld [vmem:[#allocation2 + $0xb8] sm:$0xff]  ;;  %v931_v54 = vld [vmem:[#allocation2 + $0x188] sm:$0xff] }
 0x152   : > { %955 = vst.msk [vmem:[%s1485_s23 + $0xb8] sm:$0xff] %vm289_vm1, %v905_v53  ;;  %981 = vst.msk [vmem:[%s1485_s23 + $0x188] sm:$0xff] %vm289_vm1, %v931_v54 }
 0x154   : > { %v907_v55 = vld [vmem:[#allocation2 + $0xc8] sm:$0xff] }
 0x155   : > { %957 = vst.msk [vmem:[%s1485_s23 + $0xc8] sm:$0xff] %vm289_vm1, %v907_v55 }
 0x156 PF: > { %s12_s11 = sadd.s32 1, %s1280_s11   ;;  %s1599_s9 = smov %s1276_s10 }
 0x157   : > { %p9_p5 = scmp.ge.s32.totalorder %s12_s11, 4   ;;  %s1600_s10 = smov %s1602_s12 }
 0x159   :  { %11 = sbr.rel (!%p9_p5) target bundleno = 2 (0x2), region = 69 }

</bundles_post_ra>
